<compile_context>
chip_gen: v7x
topology: tpu7x:2x2x1
jax: 0.10.0
libtpu: 0.0.40
codegen_flags: <defaults>
</compile_context>

<pallas_src>
import jax
import jax.numpy as jnp
from jax.experimental import pallas as pl
from jax.experimental.pallas import tpu as pltpu


def _round_up(x, m):
    return (x + m - 1) // m * m


def projection_kernel(z_ref, w1_ref, b1_ref, w2_ref, b2_ref, o_ref):
    # fc1: (tm, Hp) @ (Hp, Pp) -> (tm, Pp); bf16 operands, f32 MXU accumulate.
    h = jnp.dot(z_ref[...], w1_ref[...], preferred_element_type=jnp.float32)
    h = h + b1_ref[...]                                   # (tm, Pp) + (1, Pp)
    # ELU (alpha=1.0) in f32. Clamp the exp argument so the non-selected branch
    # never sees +inf (safe under differentiation, identical EUP cost).
    h = jnp.where(h > 0.0, h, jnp.exp(jnp.minimum(h, 0.0)) - 1.0)
    # fc2: cast down to bf16 only for the MXU operands, accumulate in f32.
    o = jnp.dot(h.astype(w2_ref.dtype), w2_ref[...],
                preferred_element_type=jnp.float32)
    o = o + b2_ref[...]                                   # (tm, Hp) + (1, Hp)
    o_ref[...] = o.astype(o_ref.dtype)


def projection(z, w1, b1, w2, b2, *, tm=256, compute_dtype=jnp.bfloat16):
    """z: (N, H); w1: (H, P); b1: (P,); w2: (P, H); b2: (H,) -> (N, H)."""
    N, H = z.shape
    P = w1.shape[1]
    out_dtype = z.dtype

    # bf16 packs 16 rows per sublane group -> keep tm a multiple of 16.
    tm = max(16, _round_up(tm, 16))

    # Lane-dense padding of the feature dims to multiples of 128.
    Hp = _round_up(max(H, 128), 128)
    Pp = _round_up(max(P, 128), 128)
    Np = _round_up(N, tm)

    zp = jnp.zeros((Np, Hp), compute_dtype).at[:N, :H].set(z.astype(compute_dtype))
    w1p = jnp.zeros((Hp, Pp), compute_dtype).at[:H, :P].set(w1.astype(compute_dtype))
    w2p = jnp.zeros((Pp, Hp), compute_dtype).at[:P, :H].set(w2.astype(compute_dtype))
    # Biases stay f32; they are added after the f32 accumulation.
    b1p = jnp.zeros((1, Pp), jnp.float32).at[0, :P].set(b1.astype(jnp.float32))
    b2p = jnp.zeros((1, Hp), jnp.float32).at[0, :H].set(b2.astype(jnp.float32))

    grid = (Np // tm,)
    cbytes = jnp.dtype(compute_dtype).itemsize

    # Explicit VMEM budget: double-buffered z/out tiles + resident (default
    # double-buffered) weights + f32 intermediates, with 2x headroom, clamped
    # so it stays portable to v7x's 64 MiB VMEM.
    vmem_est = (
        2 * tm * Hp * cbytes                    # z tiles
        + 2 * tm * Hp * 4                       # out tiles (f32)
        + 2 * (Hp * Pp + Pp * Hp) * cbytes      # W1 / W2
        + 2 * (Pp + Hp) * 4                     # biases
        + 2 * tm * Pp * 4 + tm * Hp * 4         # in-kernel f32 intermediates
    )
    vmem_limit = int(min(max(2 * vmem_est, 16 * 1024 * 1024), 64 * 1024 * 1024))

    out = pl.pallas_call(
        projection_kernel,
        out_shape=jax.ShapeDtypeStruct((Np, Hp), jnp.float32),
        grid_spec=pltpu.PrefetchScalarGridSpec(
            num_scalar_prefetch=0,
            grid=grid,
            in_specs=[
                pl.BlockSpec((tm, Hp), lambda i: (i, 0)),   # z row tile
                pl.BlockSpec((Hp, Pp), lambda i: (0, 0)),   # W1 (resident)
                pl.BlockSpec((1, Pp), lambda i: (0, 0)),    # b1
                pl.BlockSpec((Pp, Hp), lambda i: (0, 0)),   # W2 (resident)
                pl.BlockSpec((1, Hp), lambda i: (0, 0)),    # b2
            ],
            out_specs=pl.BlockSpec((tm, Hp), lambda i: (i, 0)),
        ),
        compiler_params=pltpu.CompilerParams(
            dimension_semantics=("parallel",),   # row tiles shard across TCs on v7x
            vmem_limit_bytes=vmem_limit,
        ),
    )(zp, w1p, b1p, w2p, b2p)

    return out[:N, :H].astype(out_dtype)


def projection_ref(z, w1, b1, w2, b2, compute_dtype=jnp.float32):
    f32 = jnp.float32
    zc = z.astype(compute_dtype).astype(f32)
    w1c = w1.astype(compute_dtype).astype(f32)
    w2c = w2.astype(compute_dtype).astype(f32)
    h = zc @ w1c + b1.astype(f32)
    h = jnp.where(h > 0.0, h, jnp.exp(jnp.minimum(h, 0.0)) - 1.0)
    h = h.astype(compute_dtype).astype(f32)
    return h @ w2c + b2.astype(f32)


if __name__ == "__main__":
    # args.num_hidden = 32, args.num_proj_hidden = 64 (small synthetic sizes)
    num_hidden, num_proj_hidden = 32, 64
    N = 512  # 2 row tiles of 256 -> even grid >= 2, feeds both v7x TensorCores

    key = jax.random.PRNGKey(0)
    kz, k1, k2, k3, k4 = jax.random.split(key, 5)

    # Deterministic PyTorch-style Linear init: U(-1/sqrt(fan_in), 1/sqrt(fan_in)),
    # stored already transposed to (in_features, out_features).
    bound1 = 1.0 / jnp.sqrt(num_hidden)
    bound2 = 1.0 / jnp.sqrt(num_proj_hidden)
    w1 = jax.random.uniform(k1, (num_hidden, num_proj_hidden),
                            jnp.float32, -bound1, bound1)
    b1 = jax.random.uniform(k2, (num_proj_hidden,), jnp.float32, -bound1, bound1)
    w2 = jax.random.uniform(k3, (num_proj_hidden, num_hidden),
                            jnp.float32, -bound2, bound2)
    b2 = jax.random.uniform(k4, (num_hidden,), jnp.float32, -bound2, bound2)

    z = jax.random.normal(kz, (N, num_hidden), jnp.float32)

    out = projection(z, w1, b1, w2, b2, tm=256)
    out = jax.block_until_ready(out)

    # Reference with the same bf16 operand rounding as the kernel's MXU path.
    ref_bf16 = projection_ref(z, w1, b1, w2, b2, compute_dtype=jnp.bfloat16)
    # Pure f32 reference (module semantics), loose tolerance for bf16 operands.
    ref_f32 = projection_ref(z, w1, b1, w2, b2, compute_dtype=jnp.float32)

    assert out.shape == (N, num_hidden)
    assert out.dtype == z.dtype
    assert jnp.allclose(out, ref_bf16, atol=1e-3, rtol=1e-3), \
        float(jnp.max(jnp.abs(out - ref_bf16)))
    assert jnp.allclose(out, ref_f32, atol=3e-2, rtol=3e-2), \
        float(jnp.max(jnp.abs(out - ref_f32)))
    print("KERNEL_OK")
</pallas_src>

<mosaic_0001>
module attributes {stable_mosaic.version = 11 : i64} {
  func.func @projection_kernel(%arg0: i32, %arg1: memref<256x128xbf16, #tpu.memory_space<vmem>>, %arg2: memref<128x128xbf16, #tpu.memory_space<vmem>>, %arg3: memref<1x128xf32, #tpu.memory_space<vmem>>, %arg4: memref<128x128xbf16, #tpu.memory_space<vmem>>, %arg5: memref<1x128xf32, #tpu.memory_space<vmem>>, %arg6: memref<256x128xf32, #tpu.memory_space<vmem>>) attributes {dimension_semantics = [#tpu.dimension_semantics<parallel>], iteration_bounds = array<i64: 2>, scalar_prefetch = 0 : i64, scratch_operands = 0 : i64, tpu.core_type = #tpu.core_type<tc>, window_params = [{transform_indices = @transform_0, window_bounds = array<i64: 256, 128>}, {pipeline_mode = #tpu.pipeline_mode<synchronous>, transform_indices = @transform_1, window_bounds = array<i64: 128, 128>}, {pipeline_mode = #tpu.pipeline_mode<synchronous>, transform_indices = @transform_2, window_bounds = array<i64: 1, 128>}, {pipeline_mode = #tpu.pipeline_mode<synchronous>, transform_indices = @transform_3, window_bounds = array<i64: 128, 128>}, {pipeline_mode = #tpu.pipeline_mode<synchronous>, transform_indices = @transform_4, window_bounds = array<i64: 1, 128>}, {transform_indices = @transform_5, window_bounds = array<i64: 256, 128>}]} {
    %c0 = arith.constant 0 : index
    %c0_0 = arith.constant 0 : index
    %0 = vector.load %arg1[%c0, %c0_0] : memref<256x128xbf16, #tpu.memory_space<vmem>>, vector<256x128xbf16>
    %c0_1 = arith.constant 0 : index
    %c0_2 = arith.constant 0 : index
    %1 = vector.load %arg2[%c0_1, %c0_2] : memref<128x128xbf16, #tpu.memory_space<vmem>>, vector<128x128xbf16>
    %cst = arith.constant dense<0.000000e+00> : vector<256x128xf32>
    %2 = tpu.matmul %0, %1, %cst {dimension_numbers = #tpu.dot_dimension_numbers<[1], [0], [0], [1], [0, 0, 1, 1], [], []>} : vector<256x128xbf16>, vector<128x128xbf16>, vector<256x128xf32> -> vector<256x128xf32>
    %c0_3 = arith.constant 0 : index
    %c0_4 = arith.constant 0 : index
    %3 = vector.load %arg3[%c0_3, %c0_4] : memref<1x128xf32, #tpu.memory_space<vmem>>, vector<1x128xf32>
    %4 = vector.broadcast %3 : vector<1x128xf32> to vector<256x128xf32>
    %5 = arith.addf %2, %4 : vector<256x128xf32>
    %cst_5 = arith.constant 0.000000e+00 : f32
    %6 = vector.broadcast %cst_5 : f32 to vector<256x128xf32>
    %7 = arith.cmpf ogt, %5, %6 : vector<256x128xf32>
    %cst_6 = arith.constant 0.000000e+00 : f32
    %8 = vector.broadcast %cst_6 : f32 to vector<256x128xf32>
    %9 = arith.minimumf %5, %8 : vector<256x128xf32>
    %10 = math.exp %9 : vector<256x128xf32>
    %cst_7 = arith.constant 1.000000e+00 : f32
    %11 = vector.broadcast %cst_7 : f32 to vector<256x128xf32>
    %12 = arith.subf %10, %11 : vector<256x128xf32>
    %13 = arith.select %7, %5, %12 : vector<256x128xi1>, vector<256x128xf32>
    %14 = arith.truncf %13 : vector<256x128xf32> to vector<256x128xbf16>
    %c0_8 = arith.constant 0 : index
    %c0_9 = arith.constant 0 : index
    %15 = vector.load %arg4[%c0_8, %c0_9] : memref<128x128xbf16, #tpu.memory_space<vmem>>, vector<128x128xbf16>
    %cst_10 = arith.constant dense<0.000000e+00> : vector<256x128xf32>
    %16 = tpu.matmul %14, %15, %cst_10 {dimension_numbers = #tpu.dot_dimension_numbers<[1], [0], [0], [1], [0, 0, 1, 1], [], []>} : vector<256x128xbf16>, vector<128x128xbf16>, vector<256x128xf32> -> vector<256x128xf32>
    %c0_11 = arith.constant 0 : index
    %c0_12 = arith.constant 0 : index
    %17 = vector.load %arg5[%c0_11, %c0_12] : memref<1x128xf32, #tpu.memory_space<vmem>>, vector<1x128xf32>
    %18 = vector.broadcast %17 : vector<1x128xf32> to vector<256x128xf32>
    %19 = arith.addf %16, %18 : vector<256x128xf32>
    %c0_13 = arith.constant 0 : index
    %c0_14 = arith.constant 0 : index
    %20 = vector.load %arg6[%c0_13, %c0_14] : memref<256x128xf32, #tpu.memory_space<vmem>>, vector<256x128xf32>
    tpu.vector_store %arg6[%c0_13, %c0_14], %19 {strides = array<i32>} : memref<256x128xf32, #tpu.memory_space<vmem>>, vector<256x128xf32>,
    return
  }
  func.func @transform_0(%arg0: i32) -> (i32, i32) {
    %c0_i32 = arith.constant 0 : i32
    %c0_i32_0 = arith.constant 0 : i32
    return %arg0, %c0_i32 : i32, i32
  }
  func.func @transform_1(%arg0: i32) -> (i32, i32) {
    %c0_i32 = arith.constant 0 : i32
    %c0_i32_0 = arith.constant 0 : i32
    %c0_i32_1 = arith.constant 0 : i32
    return %c0_i32, %c0_i32_0 : i32, i32
  }
  func.func @transform_2(%arg0: i32) -> (i32, i32) {
    %c0_i32 = arith.constant 0 : i32
    %c0_i32_0 = arith.constant 0 : i32
    %c0_i32_1 = arith.constant 0 : i32
    return %c0_i32, %c0_i32_0 : i32, i32
  }
  func.func @transform_3(%arg0: i32) -> (i32, i32) {
    %c0_i32 = arith.constant 0 : i32
    %c0_i32_0 = arith.constant 0 : i32
    %c0_i32_1 = arith.constant 0 : i32
    return %c0_i32, %c0_i32_0 : i32, i32
  }
  func.func @transform_4(%arg0: i32) -> (i32, i32) {
    %c0_i32 = arith.constant 0 : i32
    %c0_i32_0 = arith.constant 0 : i32
    %c0_i32_1 = arith.constant 0 : i32
    return %c0_i32, %c0_i32_0 : i32, i32
  }
  func.func @transform_5(%arg0: i32) -> (i32, i32) {
    %c0_i32 = arith.constant 0 : i32
    %c0_i32_0 = arith.constant 0 : i32
    return %arg0, %c0_i32 : i32, i32
  }
}

</mosaic_0001>

<bundles_post_ra>
// kernel: tpu_custom_call.1
= control target key start
LH: loop header
LB: loop body
LE: loop exit
PB: predicated region body
PF: predicated region fallthrough
CT: control target
= control target key end

     0   :  { %10 = vsyncpa [#allocation3], 0  ;;  %s2349_s0 = inlined_call_operand.hbm [shape: bf16[512,128], index: 0, kind: input, shape index: {}]   ;;  %s2350_s1 = inlined_call_operand.hbm [shape: bf16[128,128], index: 1, kind: input, shape index: {}]   ;;  %s2351_s2 = inlined_call_operand.vmem [shape: f32[1,128], index: 2, kind: input, shape index: {}]   ;;  %s2352_s3 = inlined_call_operand.hbm [shape: bf16[128,128], index: 3, kind: input, shape index: {}]   ;;  %s2353_s4 = inlined_call_operand.vmem [shape: f32[1,128], index: 4, kind: input, shape index: {}]   ;;  %s2354_s5 = inlined_call_operand.hbm [shape: f32[512,128], index: 5, kind: output, shape index: {}]  }
   0x1   :  { %12 = vsyncpa [#allocation3 + $0x1], 0 }
   0x2   :  { %13 = vsyncpa [#allocation6], 0 }
   0x3   :  { %14 = vsyncpa [#allocation4], 0 }
   0x4   :  { %16 = vsyncpa [#allocation4 + $0x1], 0  ;;  %s1806_s18 = smov 0   ;;  %s1808_s19 = smov 0  }
   0x5   :  { %s1810_s20 = smov 0   ;;  %s1812_s21 = smov 0  }
   0x6 LB: > { %s1827_s22 = sadd.s32 4294967295, %s1766_s21   ;;  %s1213_s23 = sadd.s32 4294967294, %s1766_s21   ;;  %s1766_s21 = sphi %s1812_s21, %s2374_s21   ;;  %s1762_s20 = sphi %s1810_s20, %s2373_s20   ;;  %s1758_s19 = sphi %s1808_s19, %s2372_s19   ;;  %s1754_s18 = sphi %s1806_s18, %s2371_s18  }
   0x7   : > { %p42_p0 = scmp.ne.s32.totalorder %s1758_s19, %s1754_s18  ;;  %p2355_p1 = scmp.eq.s32.totalorder %s1827_s22, 0 }
   0x8   : > { %p156_p3 = scmp.eq.s32.totalorder %s1213_s23, 1  ;;  %p1214_p5 = scmp.ge.s32.totalorder %s1766_s21, 1 }
   0x9   : > { %p1836_p4 = por %p2355_p1, %p42_p0  ;;  %p163_p7 = scmp.lt.s32.totalorder %s1766_s21, 3 }
   0xa   : > { %p1841_p6 = por %p156_p3, %p42_p0  ;;  %s1768_s27 = smov [#allocation5]  }
   0xb   : > { %s2358_s24 = scalar_select %p1836_p4, 1, 0 }
   0xc   : > { %s2359_s25 = scalar_select %p1841_p6, 1, 0 }
   0xd   : > { %p1846_p8 = pnand %p1214_p5, %p163_p7  ;;  %s175_s28 = sshll.u32 %s1768_s27, 4  ;;  %s1850_s28 = int_to_ptr.vmem [resolvable:$true] %s175_s28 }
   0xe   : > { %s1769_s30 = smov [#allocation7]   ;;  %s1610_s9 = scalar_lea.hbm %s2350_s1, 1024 }
   0xf   : > { %p1455_p9 = pneg %p1846_p8  ;;  %s191_s6 = sshll.u32 %s1769_s30, 4  ;;  %s1861_s6 = int_to_ptr.vmem [resolvable:$true] %s191_s6 }
  0x10   : > { %p1611_p12 = scmp.ne.s32.totalorder %s2350_s1, %s1610_s9  ;;  %p1617_p5 = scmp.lt.u32.totalorder %s1610_s9, %s2350_s1 }
  0x11   : > { %p1857_p11 = pnand %p1455_p9, %p2355_p1 }
  0x13   : > { %p1612_p13 = pneg %p1857_p11 }
  0x15   : > { %p1613_p0 = pnand %p1612_p13, %p1611_p12 }
  0x17   : > { %p1614_p3 = pneg %p1613_p0 }
  0x19   : > { %p1619_p7 = pnand %p1617_p5, %p1614_p3 }
  0x1b   : > { %1622 = shalt.err (!%p1619_p7)
}
  0x1c   : > { %s1623_s14 = scalar_lea.vmem %s1850_s28, 1024  ;;  %p1631_p2 = scmp.lt.s32.totalorder %s1850_s28, %s1850_s28 }
  0x1d   : > { %p1624_p9 = scmp.ne.s32.totalorder %s1850_s28, %s1623_s14  ;;  %p1632_p12 = scmp.lt.s32.totalorder %s1623_s14, %s1623_s14 }
  0x1f   : > { %p1626_p10 = pnand %p1624_p9, %p1612_p13  ;;  %p1633_p0 = por %p1632_p12, %p1631_p2 }
  0x21   : > { %p1627_p1 = pneg %p1626_p10 }
  0x23   : > { %p1634_p6 = pnand %p1633_p0, %p1627_p1 }
  0x25   : > { %1637 = shalt.err (!%p1634_p6)
}
  0x26   : > { %s1770_s15 = smov 64   ;;  %s1771_s16 = smov 4  }
  0x27   : > { %1458 = dma.hbm_to_vmem [thread:$0]  (!%p1857_p11), %s2350_s1, 1024, %s1850_s28, [#allocation6], %s1770_s15, %s1770_s15, %s1771_s16  }
  0x28   : > { %s1638_s7 = scalar_lea.hbm %s2352_s3, 1024 }
  0x29   : > { %p1639_p1 = scmp.ne.s32.totalorder %s2352_s3, %s1638_s7  ;;  %p1645_p10 = scmp.lt.u32.totalorder %s1638_s7, %s2352_s3 }
  0x2b   : > { %p1641_p2 = pnand %p1639_p1, %p1612_p13 }
  0x2d   : > { %p1642_p6 = pneg %p1641_p2 }
  0x2f   : > { %p1647_p3 = pnand %p1645_p10, %p1642_p6 }
  0x31   : > { %1650 = shalt.err (!%p1647_p3)
}
  0x32   : > { %s1651_s28 = scalar_lea.vmem %s1861_s6, 1024  ;;  %p1659_p12 = scmp.lt.s32.totalorder %s1861_s6, %s1861_s6 }
  0x33   : > { %p1652_p5 = scmp.ne.s32.totalorder %s1861_s6, %s1651_s28  ;;  %p1660_p0 = scmp.lt.s32.totalorder %s1651_s28, %s1651_s28 }
  0x35   : > { %p1654_p7 = pnand %p1652_p5, %p1612_p13  ;;  %p1661_p1 = por %p1660_p0, %p1659_p12 }
  0x37   : > { %p1655_p9 = pneg %p1654_p7 }
  0x39   : > { %p1662_p2 = pnand %p1661_p1, %p1655_p9 }
  0x3b   : > { %1665 = shalt.err (!%p1662_p2)
}
  0x3c   : > { %1461 = dma.hbm_to_vmem [thread:$0]  (!%p1857_p11), %s2352_s3, 1024, %s1861_s6, [#allocation6], %s1770_s15, %s1770_s15, %s1771_s16  }
  0x3d   : > { %s1922_s29 = sadd.s32 1, %s1766_s21   ;;  %s29_s14 = sadd.s32 1, %s1762_s20 }
  0x3e   : > { %s26_s17 = ssub.s32 %s1766_s21, %s1922_s29  ;;  %p36_p13 = scmp.ne.s32.totalorder %s1762_s20, %s1758_s19 }
  0x3f   : > { %p27_p6 = scmp.eq.s32.totalorder %s26_s17, 0  ;;  %p37_p10 = scmp.eq.s32.totalorder %s1766_s21, 0 }
  0x40   : > { %p2362_p3 = scmp.eq.s32.totalorder %s1827_s22, 1  ;;  %p1472_p7 = scmp.lt.s32.totalorder %s1766_s21, 2 }
  0x41   : > { %s1938_s27 = scalar_select %p27_p6, %s1762_s20, %s29_s14  }
  0x42   : > { %p1932_p5 = por %p2362_p3, %p36_p13  ;;  %p38_p9 = por %p37_p10, %p36_p13 }
  0x43   : > { %s208_s30 = sand.u32 1, %s1762_s20   ;;  %s1297_s6 = sshll.u32 %s1766_s21, 11 }
  0x44   : > { %s2363_s23 = scalar_select %p1932_p5, 1, 0 }
  0x45   : > { %s1218_s7 = sshll.u32 %s208_s30, 7  ;;  %s1945_s10 = scalar_lea.hbm %s2349_s0, %s1297_s6 }
  0x46   : > { %s212_s11 = scalar_lea.vmem [#allocation2], %s1218_s7  ;;  %p1949_p11 = pnand %p1472_p7, %p38_p9 }
  0x47   : > { %s219_s28 = sshll.u32 %s212_s11, 4  ;;  %s1953_s13 = scalar_lea.sflag [#allocation3], %s208_s30  ;;  %s1947_s28 = int_to_ptr.vmem [resolvable:$true] %s219_s28 }
  0x48   : > { %s1666_s14 = scalar_lea.hbm %s1945_s10, 2048  ;;  %p1668_p0 = pneg %p1949_p11 }
  0x49   : > { %p1667_p12 = scmp.ne.s32.totalorder %s1945_s10, %s1666_s14  ;;  %s1671_s6 = scalar_lea.hbm %s2349_s0, 4096 }
  0x4a   : > { %p1672_p13 = scmp.lt.u32.totalorder %s1945_s10, %s2349_s0  ;;  %p1673_p6 = scmp.lt.u32.totalorder %s1671_s6, %s1666_s14 }
  0x4b   : > { %p1669_p1 = pnand %p1668_p0, %p1667_p12  ;;  %p1675_p3 = scmp.lt.u32.totalorder %s1666_s14, %s1945_s10 }
  0x4c   : > { %p1674_p10 = por %p1673_p6, %p1672_p13 }
  0x4d   : > { %p1670_p2 = pneg %p1669_p1 }
  0x4e   : > { %p1676_p7 = por %p1675_p3, %p1674_p10 }
  0x50   : > { %p1677_p9 = pnand %p1676_p7, %p1670_p2 }
  0x52   : > { %1680 = shalt.err (!%p1677_p9)
}
  0x53   : > { %s1681_s30 = scalar_lea.vmem %s1947_s28, 2048  ;;  %s1772_s11 = smov [#allocation2]  }
  0x54   : > { %p1682_p12 = scmp.ne.s32.totalorder %s1947_s28, %s1681_s30  ;;  %s1686_s17 = sshll.u32 %s1772_s11, 4  ;;  %s1687_s17 = int_to_ptr.vmem [resolvable:$false] %s1686_s17 }
  0x55   : > { %s1688_s7 = scalar_lea.vmem %s1687_s17, 4096  ;;  %p1689_p4 = scmp.lt.s32.totalorder %s1947_s28, %s1687_s17 }
  0x56   : > { %p1684_p1 = pnand %p1682_p12, %p1668_p0  ;;  %p1690_p13 = scmp.lt.s32.totalorder %s1688_s7, %s1681_s30 }
  0x58   : > { %p1685_p5 = pneg %p1684_p1  ;;  %p1691_p6 = por %p1690_p13, %p1689_p4 }
  0x5a   : > { %p1692_p10 = pnand %p1691_p6, %p1685_p5 }
  0x5c   : > { %1695 = shalt.err (!%p1692_p10)
}
  0x5d   : > { %1465 = dma.hbm_to_vmem [thread:$0]  (!%p1949_p11), %s1945_s10, 2048, %s1947_s28, %s1953_s13, %s1770_s15, %s1770_s15, %s1771_s16  }
  0x5e   : > { %231 = sbr.rel (%p1846_p8) target bundleno = 664 (0x298), region = 40  ;;  %s1987_s14 = sand.u32 (!%p1846_p8), 1, %s1758_s19  }
  0x5f   : > { %s1222_s6 = sshll.u32 (!%p1846_p8), %s1987_s14, 7  ;;  %s234_s8 = scalar_lea.sflag (!%p1846_p8), [#allocation3], %s1987_s14 }
  0x60   : > { %s1991_s9 = scalar_lea.vmem (!%p1846_p8), [#allocation2], %s1222_s6  ;;  %p2365_p4 = scmp.ne.s32.totalorder (!%p1846_p8), %s2358_s24, 0 }
  0x65   : > { %1741 = dma.done.wait (%p2365_p4), %s234_s8, 2048  }
  0x66   : > { %1743 = vsyncadd (%p2365_p4), %s234_s8, 4294965248  ;;  %p2366_p5 = scmp.eq.s32.totalorder %s1827_s22, 0 }
  0x68   : > { %1745 = dma.done.wait (%p2366_p5), [#allocation6], 2048   ;;  %p2367_p8 = pmov %p2366_p5 }
  0x69   : > { %v1514_v0 = vld [vmem:[#allocation5] sm:$0xff]   ;;  %v1515_v1 = vld [vmem:[#allocation5 + $0x8] sm:$0xff]   ;;  %v1516_v2 = vld [vmem:[#allocation5 + $0x10] sm:$0xff]   ;;  %s1225_s15 = sshll.u32 %s1987_s14, 8  ;;  %s1298_s12 = sshll.u32 %s1827_s22, 12 }
  0x6a   : > { %1747 = vsyncadd (%p2367_p8), [#allocation6], 4294965248  ;;  %1347 = vmatprep.subr.bf16.mxu0 %v1514_v0  ;;  %v1517_v3 = vld [vmem:[#allocation5 + $0x18] sm:$0xff]   ;;  %v1522_v4 = vld [vmem:[%s1991_s9] sm:$0xff]   ;;  %s2234_s28 = scalar_lea.vmem [#allocation8], %s1225_s15  ;;  %s2299_s17 = scalar_lea.hbm %s2354_s5, %s1298_s12 }
  0x6b   : > { %1348 = vmatpush3.bf16.msra.mxu0 %v1514_v0  ;;  %1363 = vmatprep.mubr.bf16.mxu0 %v1522_v4  ;;  %v1518_v5 = vld [vmem:[#allocation5 + $0x20] sm:$0xff]   ;;  %v1519_v6 = vld [vmem:[#allocation5 + $0x28] sm:$0xff]   ;;  %v1520_v7 = vld [vmem:[#allocation5 + $0x30] sm:$0xff]   ;;  %s1121_s13 = sshll.u32 %s2234_s28, 4  ;;  %s1108_s22 = scalar_lea.sflag [#allocation4], %s1987_s14  ;;  %s2301_s13 = int_to_ptr.vmem [resolvable:$true] %s1121_s13 }
  0x6c   : > { %1349 = vmatprep.subr.bf16.mxu0 %v1515_v1  ;;  %v1521_v8 = vld [vmem:[#allocation5 + $0x38] sm:$0xff]   ;;  %v1538_v9 = vld [vmem:[#allocation7] sm:$0xff]   ;;  %v1539_v10 = vld [vmem:[#allocation7 + $0x8] sm:$0xff]   ;;  %s1696_s7 = scalar_lea.vmem %s2301_s13, 4096  ;;  %p2368_p0 = scmp.ne.s32.totalorder %s2363_s23, 0 }
  0x6d   : > { %1395 = vmatprep.subr.bf16.mxu1 %v1538_v9  ;;  %v1523_v11 = vld [vmem:[%s1991_s9 + $0x8] sm:$0xff]   ;;  %v1524_v12 = vld [vmem:[%s1991_s9 + $0x10] sm:$0xff]   ;;  %v1525_v13 = vld [vmem:[%s1991_s9 + $0x18] sm:$0xff]   ;;  %p1697_p11 = scmp.ne.s32.totalorder %s2301_s13, %s1696_s7  ;;  %s1773_s6 = smov [#allocation8]  }
  0x6e   : > { %1396 = vmatpush3.bf16.msra.mxu1 %v1538_v9  ;;  %v1526_v14 = vld [vmem:[%s1991_s9 + $0x20] sm:$0xff]   ;;  %v1527_v15 = vld [vmem:[%s1991_s9 + $0x28] sm:$0xff]   ;;  %v1528_v16 = vld [vmem:[%s1991_s9 + $0x30] sm:$0xff]   ;;  %s1700_s8 = sshll.u32 %s1773_s6, 4  ;;  %s1701_s8 = int_to_ptr.vmem [resolvable:$false] %s1700_s8 }
  0x6f   : > { %1350 = vmatpush3.bf16.msra.mxu0 %v1515_v1  ;;  %1397 = vmatprep.subr.bf16.mxu1 %v1539_v10  ;;  %v1529_v17 = vld [vmem:[%s1991_s9 + $0x38] sm:$0xff]   ;;  %v1530_v18 = vld [vmem:[%s1991_s9 + $0x40] sm:$0xff]   ;;  %v1531_v19 = vld [vmem:[%s1991_s9 + $0x48] sm:$0xff]   ;;  %p1698_p2 = pnand %p1697_p11, %p2368_p0  ;;  %p1703_p7 = scmp.lt.s32.totalorder %s2301_s13, %s1701_s8 }
  0x70   : > { %1351 = vmatprep.subr.bf16.mxu0 %v1516_v2  ;;  %v1532_v20 = vld [vmem:[%s1991_s9 + $0x50] sm:$0xff]   ;;  %v1533_v21 = vld [vmem:[%s1991_s9 + $0x58] sm:$0xff]   ;;  %v1534_v22 = vld [vmem:[%s1991_s9 + $0x60] sm:$0xff]  }
  0x71   : > { %v1535_v23 = vld [vmem:[%s1991_s9 + $0x68] sm:$0xff]   ;;  %v1536_v24 = vld [vmem:[%s1991_s9 + $0x70] sm:$0xff]   ;;  %v1537_v25 = vld [vmem:[%s1991_s9 + $0x78] sm:$0xff]   ;;  %p1699_p3 = pneg %p1698_p2  ;;  %s1702_s9 = scalar_lea.vmem %s1701_s8, 8192 }
  0x72   : > { %1398 = vmatpush3.bf16.msra.mxu1 %v1539_v10  ;;  %v1540_v26 = vld [vmem:[#allocation7 + $0x10] sm:$0xff]   ;;  %v1541_v27 = vld [vmem:[#allocation7 + $0x18] sm:$0xff]   ;;  %v1542_v28 = vld [vmem:[#allocation7 + $0x20] sm:$0xff]   ;;  %p1704_p9 = scmp.lt.s32.totalorder %s1702_s9, %s1696_s7 }
  0x73   : > { %1352 = vmatpush3.bf16.msra.mxu0 %v1516_v2  ;;  %1399 = vmatprep.subr.bf16.mxu1 %v1540_v26  ;;  %v1543_v29 = vld [vmem:[#allocation7 + $0x28] sm:$0xff]   ;;  %v1544_v30 = vld [vmem:[#allocation7 + $0x30] sm:$0xff]   ;;  %v1545_v31 = vld [vmem:[#allocation7 + $0x38] sm:$0xff]  }
  0x74   : > { %1353 = vmatprep.subr.bf16.mxu0 %v1517_v3  ;;  %v2020_v32 = vld [vmem:[%s2351_s2] ss:$0 sm:$0xff]  ;;  %p1705_p12 = por %p1704_p9, %p1703_p7 }
  0x76   : > { %1400 = vmatpush3.bf16.msra.mxu1 %v1540_v26  ;;  %p1706_p1 = pnand %p1705_p12, %p1699_p3 }
  0x77   : > { %1354 = vmatpush3.bf16.msra.mxu0 %v1517_v3  ;;  %1401 = vmatprep.subr.bf16.mxu1 %v1541_v27 }
  0x78   : > { %1355 = vmatprep.subr.bf16.mxu0 %v1518_v5 }
  0x7a   : > { %1402 = vmatpush3.bf16.msra.mxu1 %v1541_v27 }
  0x7b   : > { %1356 = vmatpush3.bf16.msra.mxu0 %v1518_v5  ;;  %1403 = vmatprep.subr.bf16.mxu1 %v1542_v28 }
  0x7c   : > { %1357 = vmatprep.subr.bf16.mxu0 %v1519_v6 }
  0x7e   : > { %1404 = vmatpush3.bf16.msra.mxu1 %v1542_v28 }
  0x7f   : > { %1358 = vmatpush3.bf16.msra.mxu0 %v1519_v6  ;;  %1405 = vmatprep.subr.bf16.mxu1 %v1543_v29 }
  0x80   : > { %1359 = vmatprep.subr.bf16.mxu0 %v1520_v7 }
  0x82   : > { %1406 = vmatpush3.bf16.msra.mxu1 %v1543_v29 }
  0x83   : > { %1360 = vmatpush3.bf16.msra.mxu0 %v1520_v7  ;;  %1407 = vmatprep.subr.bf16.mxu1 %v1544_v30 }
  0x84   : > { %1361 = vmatprep.subr.bf16.mxu0 %v1521_v8 }
  0x86   : > { %1408 = vmatpush3.bf16.msra.mxu1 %v1544_v30 }
  0x87   : > { %1362 = vmatpush3.bf16.msra.mxu0 %v1521_v8  ;;  %1409 = vmatprep.subr.bf16.mxu1 %v1545_v31 }
  0x8a   : > { %1364 = vmatmul.mubr.bf16.vlgmr.msra.gmra.mrb[0].mxu0 %v1523_v11  ;;  %1410 = vmatpush3.bf16.msra.mxu1 %v1545_v31 }
  0x8b   : > { %1367 = vmatprep.mubr.bf16.mxu0 %v1524_v12 }
  0x92   : > { %1368 = vmatmul.mubr.bf16.gmra.mrb[4].mxu0 %v1525_v13 }
  0x93   : > { %1371 = vmatprep.mubr.bf16.mxu0 %v1526_v14 }
  0x9a   : > { %1372 = vmatmul.mubr.bf16.gmra.mrb[8].mxu0 %v1527_v15 }
  0x9b   : > { %1375 = vmatprep.mubr.bf16.mxu0 %v1528_v16 }
  0xa2   : > { %1376 = vmatmul.mubr.bf16.gmra.mrb[12].mxu0 %v1529_v17 }
  0xa3   : > { %1379 = vmatprep.mubr.bf16.mxu0 %v1530_v18 }
  0xaa   : > { %1380 = vmatmul.mubr.bf16.gmra.mrb[16].mxu0 %v1531_v19 }
  0xab   : > { %1383 = vmatprep.mubr.bf16.mxu0 %v1532_v20 }
  0xb2   : > { %1384 = vmatmul.mubr.bf16.gmra.mrb[20].mxu0 %v1533_v21 }
  0xb3   : > { %1387 = vmatprep.mubr.bf16.mxu0 %v1534_v22 }
  0xba   : > { %1388 = vmatmul.mubr.bf16.gmra.mrb[24].mxu0 %v1535_v23 }
  0xbb   : > { %1391 = vmatprep.mubr.bf16.mxu0 %v1536_v24 }
  0xc2   : > { %1392 = vmatmul.mubr.bf16.gmra.mrb[28].mxu0 %v1537_v25 }
 0x15d   : > { %v1365_v33 = vpop.f32.mrb[0].mxu0 }
 0x15e   : > { %v2023_v34 = vadd.f32 %v1365_v33, %v2020_v32  ;;  %v508_v35 = vpop.f32.mrb[1].mxu0 }
 0x15f   : > { %v2026_v36 = vadd.f32 %v2020_v32, %v508_v35  ;;  %v1366_v37 = vpop.f32.mrb[2].mxu0 }
 0x160   : > { %v669_v38 = vmin.f32 %v2023_v34, 0.0  ;;  %v2030_v39 = vadd.f32 %v1366_v37, %v2020_v32  ;;  %v511_v40 = vpop.f32.mrb[3].mxu0  ;;  %vm637_vm0 = vcmp.gt.f32.partialorder %v2023_v34, 0.0 }
 0x161   : > { %v667_v41 = vmin.f32 %v2026_v36, 0.0  ;;  %v512_v42 = vadd.f32 %v2020_v32, %v511_v40  ;;  %vm635_vm1 = vcmp.gt.f32.partialorder %v2026_v36, 0.0 }
 0x162   : > { %v703_v43 = vmul.f32 1.442695, %v669_v38  ;;  %v670_v44 = vmin.f32 %v2030_v39, 0.0  ;;  %vm638_vm2 = vcmp.gt.f32.partialorder %v2030_v39, 0.0 }
 0x163   : > { %v699_v45 = vmul.f32 1.442695, %v667_v41  ;;  %v668_v46 = vmin.f32 %v512_v42, 0.0  ;;  %vm636_vm3 = vcmp.gt.f32.partialorder %v512_v42, 0.0 }
 0x164   : > { %1546 = vpow2.f32 %v703_v43  ;;  %v705_v47 = vmul.f32 1.442695, %v670_v44 }
 0x165   : > { %1548 = vpow2.f32 %v699_v45  ;;  %v701_v48 = vmul.f32 1.442695, %v668_v46  ;;  %v1369_v49 = vpop.f32.mrb[4].mxu0 }
 0x166   : > { %1550 = vpow2.f32 %v705_v47  ;;  %v2036_v50 = vadd.f32 %v1369_v49, %v2020_v32  ;;  %v524_v51 = vpop.f32.mrb[5].mxu0 }
 0x167   : > { %1552 = vpow2.f32 %v701_v48  ;;  %v2039_v52 = vadd.f32 %v2020_v32, %v524_v51  ;;  %v1370_v53 = vpop.f32.mrb[6].mxu0 }
 0x168   : > { %v673_v54 = vmin.f32 %v2036_v50, 0.0  ;;  %v2043_v55 = vadd.f32 %v1370_v53, %v2020_v32  ;;  %v527_v56 = vpop.f32.mrb[7].mxu0  ;;  %vm641_vm4 = vcmp.gt.f32.partialorder %v2036_v50, 0.0 }
 0x169   : > { %v671_v57 = vmin.f32 %v2039_v52, 0.0  ;;  %v2047_v58 = vadd.f32 %v2020_v32, %v527_v56  ;;  %vm639_vm5 = vcmp.gt.f32.partialorder %v2039_v52, 0.0 }
 0x16a   : > { %v711_v59 = vmul.f32 1.442695, %v673_v54  ;;  %v674_v60 = vmin.f32 %v2043_v55, 0.0  ;;  %vm642_vm6 = vcmp.gt.f32.partialorder %v2043_v55, 0.0 }
 0x16b   : > { %v707_v61 = vmul.f32 1.442695, %v671_v57  ;;  %v672_v62 = vmin.f32 %v2047_v58, 0.0  ;;  %vm640_vm7 = vcmp.gt.f32.partialorder %v2047_v58, 0.0 }
 0x16c   : > { %1554 = vpow2.f32 %v711_v59  ;;  %v713_v63 = vmul.f32 1.442695, %v674_v60 }
 0x16d   : > { %1556 = vpow2.f32 %v707_v61  ;;  %v709_v0 = vmul.f32 1.442695, %v672_v62  ;;  %v1373_v1 = vpop.f32.mrb[8].mxu0 }
 0x16e   : > { %v1547_v2 = vpop.eup %1546  ;;  %1558 = vpow2.f32 %v713_v63  ;;  %v2052_v3 = vadd.f32 %v1373_v1, %v2020_v32  ;;  %v540_v4 = vpop.f32.mrb[9].mxu0 }
 0x16f   : > { %v1549_v5 = vpop.eup %1548  ;;  %1560 = vpow2.f32 %v709_v0  ;;  %v2056_v6 = vadd.f32 %v2020_v32, %v540_v4  ;;  %v1374_v7 = vpop.f32.mrb[10].mxu0  ;;  %v1253_v9 = vadd.f32 -1.0, %v1547_v2 }
 0x170   : > { %v1551_v8 = vpop.eup %1550  ;;  %v677_v10 = vmin.f32 %v2052_v3, 0.0  ;;  %v2060_v11 = vadd.f32 %v1374_v7, %v2020_v32  ;;  %v543_v12 = vpop.f32.mrb[11].mxu0  ;;  %v1251_v13 = vadd.f32 -1.0, %v1549_v5  ;;  %vm645_vm8 = vcmp.gt.f32.partialorder %v2052_v3, 0.0 }
 0x171   : > { %v1553_v14 = vpop.eup %1552  ;;  %v1254_v15 = vadd.f32 -1.0, %v1551_v8  ;;  %v675_v16 = vmin.f32 %v2056_v6, 0.0  ;;  %v2064_v17 = vadd.f32 %v2020_v32, %v543_v12  ;;  %v797_v26 = vsel %vm637_vm0, %v2023_v34, %v1253_v9 }
 0x172   : > { %v719_v18 = vmul.f32 1.442695, %v677_v10  ;;  %v678_v19 = vmin.f32 %v2060_v11, 0.0  ;;  %v1252_v20 = vadd.f32 -1.0, %v1553_v14  ;;  %v795_v23 = vsel %vm635_vm1, %v2026_v36, %v1251_v13 }
 0x173   : > { %v715_v21 = vmul.f32 1.442695, %v675_v16  ;;  %v676_v22 = vmin.f32 %v2064_v17, 0.0  ;;  %v798_v30 = vsel %vm638_vm2, %v2030_v39, %v1254_v15  ;;  %vm643_vm9 = vcmp.gt.f32.partialorder %v2056_v6, 0.0 }
 0x174   : > { %1562 = vpow2.f32 %v719_v18  ;;  %v721_v24 = vmul.f32 1.442695, %v678_v19  ;;  %v796_v25 = vsel %vm636_vm3, %v512_v42, %v1252_v20  ;;  %v828_v36 = vpack.c.bf16 %v798_v30, %v797_v26 }
 0x175   : > { %1564 = vpow2.f32 %v715_v21  ;;  %v717_v27 = vmul.f32 1.442695, %v676_v22  ;;  %v1377_v28 = vpop.f32.mrb[12].mxu0  ;;  %v827_v29 = vpack.c.bf16 %v796_v25, %v795_v23  ;;  %vm646_vm10 = vcmp.gt.f32.partialorder %v2060_v11, 0.0 }
 0x176   : > { %v1555_v31 = vpop.eup %1554  ;;  %1566 = vpow2.f32 %v721_v24  ;;  %v2078_v33 = vadd.f32 %v1377_v28, %v2020_v32  ;;  %v556_v35 = vpop.f32.mrb[13].mxu0  ;;  %vm644_vm11 = vcmp.gt.f32.partialorder %v2064_v17, 0.0 }
 0x177   : > { %v1557_v37 = vpop.eup %1556  ;;  %1568 = vpow2.f32 %v717_v27  ;;  %v2082_v34 = vadd.f32 %v2020_v32, %v556_v35  ;;  %v1378_v38 = vpop.f32.mrb[14].mxu0  ;;  %1411 = vmatprep.mubr.bf16.mxu1 %v827_v29  ;;  %v1257_v41 = vadd.f32 -1.0, %v1555_v31 }
 0x178   : > { %v1559_v40 = vpop.eup %1558  ;;  %v1255_v42 = vadd.f32 -1.0, %v1557_v37  ;;  %v681_v39 = vmin.f32 %v2078_v33, 0.0  ;;  %v2086_v43 = vadd.f32 %v1378_v38, %v2020_v32  ;;  %v559_v44 = vpop.f32.mrb[15].mxu0  ;;  %1412 = vmatmul.mubr.bf16.vlgmr.msra.gmra.mrb[0].mxu1 %v828_v36  ;;  %vm649_vm12 = vcmp.gt.f32.partialorder %v2078_v33, 0.0 }
 0x179   : > { %v1561_v45 = vpop.eup %1560  ;;  %v1258_v46 = vadd.f32 -1.0, %v1559_v40  ;;  %v679_v47 = vmin.f32 %v2082_v34, 0.0  ;;  %v2091_v48 = vadd.f32 %v2020_v32, %v559_v44  ;;  %v801_v61 = vsel %vm641_vm4, %v2036_v50, %v1257_v41 }
 0x17a   : > { %v1256_v49 = vadd.f32 -1.0, %v1561_v45  ;;  %v727_v51 = vmul.f32 1.442695, %v681_v39  ;;  %v682_v53 = vmin.f32 %v2086_v43, 0.0  ;;  %v799_v57 = vsel %vm639_vm5, %v2039_v52, %v1255_v42 }
 0x17b   : > { %v723_v54 = vmul.f32 1.442695, %v679_v47  ;;  %v680_v56 = vmin.f32 %v2091_v48, 0.0  ;;  %v802_v1 = vsel %vm642_vm6, %v2043_v55, %v1258_v46  ;;  %vm647_vm13 = vcmp.gt.f32.partialorder %v2082_v34, 0.0 }
 0x17c   : > { %1570 = vpow2.f32 %v727_v51  ;;  %v729_v59 = vmul.f32 1.442695, %v682_v53  ;;  %v800_v60 = vsel %vm640_vm7, %v2047_v58, %v1256_v49  ;;  %v830_v5 = vpack.c.bf16 %v802_v1, %v801_v61 }
 0x17d   : > { %1572 = vpow2.f32 %v723_v54  ;;  %v725_v62 = vmul.f32 1.442695, %v680_v56  ;;  %v1381_v63 = vpop.f32.mrb[16].mxu0  ;;  %v829_v0 = vpack.c.bf16 %v800_v60, %v799_v57  ;;  %vm650_vm14 = vcmp.gt.f32.partialorder %v2086_v43, 0.0 }
 0x17e   : > { %v1563_v2 = vpop.eup %1562  ;;  %1574 = vpow2.f32 %v729_v59  ;;  %v2106_v52 = vadd.f32 %v1381_v63, %v2020_v32  ;;  %v572_v4 = vpop.f32.mrb[17].mxu0  ;;  %vm648_vm15 = vcmp.gt.f32.partialorder %v2091_v48, 0.0 }
 0x17f   : > { %v1565_v58 = vpop.eup %1564  ;;  %1576 = vpow2.f32 %v725_v62  ;;  %v2110_v50 = vadd.f32 %v2020_v32, %v572_v4  ;;  %v1382_v7 = vpop.f32.mrb[18].mxu0  ;;  %1415 = vmatprep.mubr.bf16.mxu1 %v829_v0  ;;  %v1261_v9 = vadd.f32 -1.0, %v1563_v2 }
 0x180   : > { %v1567_v8 = vpop.eup %1566  ;;  %v1259_v10 = vadd.f32 -1.0, %v1565_v58  ;;  %v685_v55 = vmin.f32 %v2106_v52, 0.0  ;;  %v2114_v12 = vadd.f32 %v1382_v7, %v2020_v32  ;;  %v575_v13 = vpop.f32.mrb[19].mxu0  ;;  %1416 = vmatmul.mubr.bf16.gmra.mrb[4].mxu1 %v830_v5  ;;  %vm653_vm0 = vcmp.gt.f32.partialorder %v2106_v52, 0.0 }
 0x181   : > { %v1569_v14 = vpop.eup %1568  ;;  %v1262_v15 = vadd.f32 -1.0, %v1567_v8  ;;  %v683_v16 = vmin.f32 %v2110_v50, 0.0  ;;  %v2119_v18 = vadd.f32 %v2020_v32, %v575_v13  ;;  %v805_v27 = vsel %vm645_vm8, %v2052_v3, %v1261_v9 }
 0x182   : > { %v1260_v19 = vadd.f32 -1.0, %v1569_v14  ;;  %v735_v20 = vmul.f32 1.442695, %v685_v55  ;;  %v686_v21 = vmin.f32 %v2114_v12, 0.0  ;;  %v803_v24 = vsel %vm643_vm9, %v2056_v6, %v1259_v10 }
 0x183   : > { %v731_v22 = vmul.f32 1.442695, %v683_v16  ;;  %v684_v23 = vmin.f32 %v2119_v18, 0.0  ;;  %v806_v31 = vsel %vm646_vm10, %v2060_v11, %v1262_v15  ;;  %vm651_vm1 = vcmp.gt.f32.partialorder %v2110_v50, 0.0 }
 0x184   : > { %1578 = vpow2.f32 %v735_v20  ;;  %v737_v25 = vmul.f32 1.442695, %v686_v21  ;;  %v804_v26 = vsel %vm644_vm11, %v2064_v17, %v1260_v19  ;;  %v832_v37 = vpack.c.bf16 %v806_v31, %v805_v27 }
 0x185   : > { %1580 = vpow2.f32 %v731_v22  ;;  %v733_v28 = vmul.f32 1.442695, %v684_v23  ;;  %v1385_v29 = vpop.f32.mrb[20].mxu0  ;;  %v831_v30 = vpack.c.bf16 %v804_v26, %v803_v24  ;;  %vm654_vm2 = vcmp.gt.f32.partialorder %v2114_v12, 0.0 }
 0x186   : > { %v1571_v35 = vpop.eup %1570  ;;  %1582 = vpow2.f32 %v737_v25  ;;  %v2134_v6 = vadd.f32 %v1385_v29, %v2020_v32  ;;  %v588_v36 = vpop.f32.mrb[21].mxu0  ;;  %vm652_vm3 = vcmp.gt.f32.partialorder %v2119_v18, 0.0 }
 0x187   : > { %v1573_v17 = vpop.eup %1572  ;;  %1584 = vpow2.f32 %v733_v28  ;;  %v2138_v3 = vadd.f32 %v2020_v32, %v588_v36  ;;  %v1386_v38 = vpop.f32.mrb[22].mxu0  ;;  %1419 = vmatprep.mubr.bf16.mxu1 %v831_v30  ;;  %v1265_v41 = vadd.f32 -1.0, %v1571_v35 }
 0x188   : > { %v1575_v40 = vpop.eup %1574  ;;  %v1263_v42 = vadd.f32 -1.0, %v1573_v17  ;;  %v689_v11 = vmin.f32 %v2134_v6, 0.0  ;;  %v2142_v39 = vadd.f32 %v1386_v38, %v2020_v32  ;;  %v591_v44 = vpop.f32.mrb[23].mxu0  ;;  %1420 = vmatmul.mubr.bf16.gmra.mrb[8].mxu1 %v832_v37  ;;  %vm657_vm4 = vcmp.gt.f32.partialorder %v2134_v6, 0.0 }
 0x189   : > { %v1577_v45 = vpop.eup %1576  ;;  %v1266_v46 = vadd.f32 -1.0, %v1575_v40  ;;  %v687_v47 = vmin.f32 %v2138_v3, 0.0  ;;  %v2147_v49 = vadd.f32 %v2020_v32, %v591_v44  ;;  %v809_v62 = vsel %vm649_vm12, %v2078_v33, %v1265_v41 }
 0x18a   : > { %v1264_v51 = vadd.f32 -1.0, %v1577_v45  ;;  %v743_v53 = vmul.f32 1.442695, %v689_v11  ;;  %v690_v54 = vmin.f32 %v2142_v39, 0.0  ;;  %v807_v59 = vsel %vm647_vm13, %v2082_v34, %v1263_v42 }
 0x18b   : > { %v739_v56 = vmul.f32 1.442695, %v687_v47  ;;  %v688_v57 = vmin.f32 %v2147_v49, 0.0  ;;  %v810_v2 = vsel %vm650_vm14, %v2086_v43, %v1266_v46  ;;  %vm655_vm5 = vcmp.gt.f32.partialorder %v2138_v3, 0.0 }
 0x18c   : > { %1586 = vpow2.f32 %v743_v53  ;;  %v745_v60 = vmul.f32 1.442695, %v690_v54  ;;  %v808_v61 = vsel %vm648_vm15, %v2091_v48, %v1264_v51  ;;  %v834_v58 = vpack.c.bf16 %v810_v2, %v809_v62 }
 0x18d   : > { %1588 = vpow2.f32 %v739_v56  ;;  %v741_v63 = vmul.f32 1.442695, %v688_v57  ;;  %v1389_v0 = vpop.f32.mrb[24].mxu0  ;;  %v833_v1 = vpack.c.bf16 %v808_v61, %v807_v59  ;;  %vm658_vm6 = vcmp.gt.f32.partialorder %v2142_v39, 0.0 }
 0x18e   : > { %v1579_v4 = vpop.eup %1578  ;;  %1590 = vpow2.f32 %v745_v60  ;;  %v2162_v34 = vadd.f32 %v1389_v0, %v2020_v32  ;;  %v604_v5 = vpop.f32.mrb[25].mxu0  ;;  %vm656_vm7 = vcmp.gt.f32.partialorder %v2147_v49, 0.0 }
 0x18f   : > { %v1581_v48 = vpop.eup %1580  ;;  %1592 = vpow2.f32 %v741_v63  ;;  %v2166_v33 = vadd.f32 %v2020_v32, %v604_v5  ;;  %v1390_v7 = vpop.f32.mrb[26].mxu0  ;;  %1423 = vmatprep.mubr.bf16.mxu1 %v833_v1  ;;  %v1269_v9 = vadd.f32 -1.0, %v1579_v4 }
 0x190   : > { %v1583_v8 = vpop.eup %1582  ;;  %v1267_v10 = vadd.f32 -1.0, %v1581_v48  ;;  %v693_v43 = vmin.f32 %v2162_v34, 0.0  ;;  %v2170_v55 = vadd.f32 %v1390_v7, %v2020_v32  ;;  %v607_v13 = vpop.f32.mrb[27].mxu0  ;;  %1424 = vmatmul.mubr.bf16.gmra.mrb[12].mxu1 %v834_v58  ;;  %vm661_vm8 = vcmp.gt.f32.partialorder %v2162_v34, 0.0 }
 0x191   : > { %v1585_v14 = vpop.eup %1584  ;;  %v1270_v15 = vadd.f32 -1.0, %v1583_v8  ;;  %v691_v16 = vmin.f32 %v2166_v33, 0.0  ;;  %v2175_v19 = vadd.f32 %v2020_v32, %v607_v13  ;;  %v813_v28 = vsel %vm653_vm0, %v2106_v52, %v1269_v9 }
 0x192   : > { %v1268_v20 = vadd.f32 -1.0, %v1585_v14  ;;  %v751_v21 = vmul.f32 1.442695, %v693_v43  ;;  %v694_v22 = vmin.f32 %v2170_v55, 0.0  ;;  %v811_v25 = vsel %vm651_vm1, %v2110_v50, %v1267_v10 }
 0x193   : > { %v747_v23 = vmul.f32 1.442695, %v691_v16  ;;  %v692_v24 = vmin.f32 %v2175_v19, 0.0  ;;  %v814_v35 = vsel %vm654_vm2, %v2114_v12, %v1270_v15  ;;  %vm662_vm9 = vcmp.gt.f32.partialorder %v2170_v55, 0.0 }
 0x194   : > { %1594 = vpow2.f32 %v751_v21  ;;  %v753_v26 = vmul.f32 1.442695, %v694_v22  ;;  %v812_v27 = vsel %vm652_vm3, %v2119_v18, %v1268_v20  ;;  %v836_v17 = vpack.c.bf16 %v814_v35, %v813_v28 }
 0x195   : > { %1596 = vpow2.f32 %v747_v23  ;;  %v749_v29 = vmul.f32 1.442695, %v692_v24  ;;  %v1393_v30 = vpop.f32.mrb[28].mxu0  ;;  %v835_v31 = vpack.c.bf16 %v812_v27, %v811_v25  ;;  %vm659_vm10 = vcmp.gt.f32.partialorder %v2166_v33, 0.0  ;;  %v2230_v27 = vld [vmem:[%s2353_s4] ss:$0 sm:$0xff] }
 0x196   : > { %v1587_v36 = vpop.eup %1586  ;;  %1598 = vpow2.f32 %v753_v26  ;;  %v2190_v50 = vadd.f32 %v1393_v30, %v2020_v32  ;;  %v620_v37 = vpop.f32.mrb[29].mxu0  ;;  %vm660_vm11 = vcmp.gt.f32.partialorder %v2175_v19, 0.0 }
 0x197   : > { %v1589_v18 = vpop.eup %1588  ;;  %1600 = vpow2.f32 %v749_v29  ;;  %v2194_v52 = vadd.f32 %v2020_v32, %v620_v37  ;;  %v1394_v38 = vpop.f32.mrb[30].mxu0  ;;  %1427 = vmatprep.mubr.bf16.mxu1 %v835_v31  ;;  %v1273_v41 = vadd.f32 -1.0, %v1587_v36 }
 0x198   : > { %v1591_v40 = vpop.eup %1590  ;;  %v1271_v42 = vadd.f32 -1.0, %v1589_v18  ;;  %v697_v12 = vmin.f32 %v2190_v50, 0.0  ;;  %v2198_v11 = vadd.f32 %v1394_v38, %v2020_v32  ;;  %v623_v44 = vpop.f32.mrb[31].mxu0  ;;  %1428 = vmatmul.mubr.bf16.gmra.mrb[16].mxu1 %v836_v17  ;;  %vm665_vm12 = vcmp.gt.f32.partialorder %v2190_v50, 0.0 }
 0x199   : > { %v1593_v45 = vpop.eup %1592  ;;  %v1274_v46 = vadd.f32 -1.0, %v1591_v40  ;;  %v695_v47 = vmin.f32 %v2194_v52, 0.0  ;;  %v624_v51 = vadd.f32 %v2020_v32, %v623_v44  ;;  %v817_v32 = vsel %vm657_vm4, %v2134_v6, %v1273_v41 }
 0x19a   : > { %v1272_v53 = vadd.f32 -1.0, %v1593_v45  ;;  %v759_v54 = vmul.f32 1.442695, %v697_v12  ;;  %v698_v56 = vmin.f32 %v2198_v11, 0.0  ;;  %v815_v60 = vsel %vm655_vm5, %v2138_v3, %v1271_v42 }
 0x19b   : > { %v755_v57 = vmul.f32 1.442695, %v695_v47  ;;  %v696_v59 = vmin.f32 %v624_v51, 0.0  ;;  %v818_v1 = vsel %vm658_vm6, %v2142_v39, %v1274_v46  ;;  %vm666_vm13 = vcmp.gt.f32.partialorder %v2198_v11, 0.0 }
 0x19c   : > { %1602 = vpow2.f32 %v759_v54  ;;  %v761_v61 = vmul.f32 1.442695, %v698_v56  ;;  %v816_v62 = vsel %vm656_vm7, %v2147_v49, %v1272_v53  ;;  %v838_v4 = vpack.c.bf16 %v818_v1, %v817_v32 }
 0x19d   : > { %1604 = vpow2.f32 %v755_v57  ;;  %v757_v63 = vmul.f32 1.442695, %v696_v59  ;;  %v837_v0 = vpack.c.bf16 %v816_v62, %v815_v60  ;;  %vm663_vm14 = vcmp.gt.f32.partialorder %v2194_v52, 0.0 }
 0x19e   : > { %v1595_v2 = vpop.eup %1594  ;;  %1606 = vpow2.f32 %v761_v61  ;;  %vm664_vm15 = vcmp.gt.f32.partialorder %v624_v51, 0.0 }
 0x19f   : > { %v1597_v5 = vpop.eup %1596  ;;  %v1277_v58 = vadd.f32 -1.0, %v1595_v2  ;;  %1608 = vpow2.f32 %v757_v63  ;;  %1431 = vmatprep.mubr.bf16.mxu1 %v837_v0 }
 0x1a0   : > { %v1599_v3 = vpop.eup %1598  ;;  %v1275_v48 = vadd.f32 -1.0, %v1597_v5  ;;  %1432 = vmatmul.mubr.bf16.gmra.mrb[20].mxu1 %v838_v4 }
 0x1a1   : > { %v1601_v49 = vpop.eup %1600  ;;  %v1278_v7 = vadd.f32 -1.0, %v1599_v3  ;;  %v821_v39 = vsel %vm661_vm8, %v2162_v34, %v1277_v58 }
 0x1a2   : > { %v1276_v6 = vadd.f32 -1.0, %v1601_v49  ;;  %v819_v9 = vsel %vm659_vm10, %v2166_v33, %v1275_v48 }
 0x1a3   : > { %v822_v8 = vsel %vm662_vm9, %v2170_v55, %v1278_v7 }
 0x1a4   : > { %v820_v10 = vsel %vm660_vm11, %v2175_v19, %v1276_v6  ;;  %v840_v43 = vpack.c.bf16 %v822_v8, %v821_v39 }
 0x1a5   : > { %v839_v13 = vpack.c.bf16 %v820_v10, %v819_v9 }
 0x1a6   : > { %v1603_v14 = vpop.eup %1602 }
 0x1a7   : > { %v1605_v15 = vpop.eup %1604  ;;  %v1281_v16 = vadd.f32 -1.0, %v1603_v14  ;;  %1435 = vmatprep.mubr.bf16.mxu1 %v839_v13 }
 0x1a8   : > { %v1607_v20 = vpop.eup %1606  ;;  %v1279_v21 = vadd.f32 -1.0, %v1605_v15  ;;  %1436 = vmatmul.mubr.bf16.gmra.mrb[24].mxu1 %v840_v43 }
 0x1a9   : > { %v1609_v22 = vpop.eup %1608  ;;  %v1282_v23 = vadd.f32 -1.0, %v1607_v20  ;;  %v825_v33 = vsel %vm665_vm12, %v2190_v50, %v1281_v16 }
 0x1aa   : > { %v1280_v34 = vadd.f32 -1.0, %v1609_v22  ;;  %v823_v19 = vsel %vm663_vm14, %v2194_v52, %v1279_v21 }
 0x1ab   : > { %v826_v55 = vsel %vm666_vm13, %v2198_v11, %v1282_v23 }
 0x1ac   : > { %v824_v24 = vsel %vm664_vm15, %v624_v51, %v1280_v34  ;;  %v842_v25 = vpack.c.bf16 %v826_v55, %v825_v33 }
 0x1ad   : > { %v841_v26 = vpack.c.bf16 %v824_v24, %v823_v19 }
 0x1af   : > { %1439 = vmatprep.mubr.bf16.mxu1 %v841_v26 }
 0x1b0   : > { %1440 = vmatmul.mubr.bf16.gmra.mrb[28].mxu1 %v842_v25 }
 0x24b   : > { %v1413_v28 = vpop.f32.mrb[0].mxu1 }
 0x24c   : > { %v957_v29 = vadd.f32 %v1413_v28, %v2230_v27  ;;  %v948_v30 = vpop.f32.mrb[1].mxu1 }
 0x24d   : > { %v949_v31 = vadd.f32 %v2230_v27, %v948_v30  ;;  %v1414_v35 = vpop.f32.mrb[2].mxu1 }
 0x24e   : > { %1077 = vst [vmem:[%s2234_s28 + $0x10] sm:$0xff] %v957_v29  ;;  %v960_v36 = vadd.f32 %v1414_v35, %v2230_v27  ;;  %v951_v50 = vpop.f32.mrb[3].mxu1 }
 0x24f   : > { %1075 = vst [vmem:[%s2234_s28] sm:$0xff] %v949_v31  ;;  %v952_v37 = vadd.f32 %v2230_v27, %v951_v50 }
 0x250   : > { %1078 = vst [vmem:[%s2234_s28 + $0x18] sm:$0xff] %v960_v36 }
 0x251   : > { %1076 = vst [vmem:[%s2234_s28 + $0x8] sm:$0xff] %v952_v37 }
 0x253   : > { %v1417_v17 = vpop.f32.mrb[4].mxu1 }
 0x254   : > { %v973_v18 = vadd.f32 %v1417_v17, %v2230_v27  ;;  %v964_v52 = vpop.f32.mrb[5].mxu1 }
 0x255   : > { %v965_v38 = vadd.f32 %v2230_v27, %v964_v52  ;;  %v1418_v40 = vpop.f32.mrb[6].mxu1 }
 0x256   : > { %1081 = vst [vmem:[%s2234_s28 + $0x30] sm:$0xff] %v973_v18  ;;  %v976_v41 = vadd.f32 %v1418_v40, %v2230_v27  ;;  %v967_v42 = vpop.f32.mrb[7].mxu1 }
 0x257   : > { %1079 = vst [vmem:[%s2234_s28 + $0x20] sm:$0xff] %v965_v38  ;;  %v968_v12 = vadd.f32 %v2230_v27, %v967_v42 }
 0x258   : > { %1082 = vst [vmem:[%s2234_s28 + $0x38] sm:$0xff] %v976_v41 }
 0x259   : > { %1080 = vst [vmem:[%s2234_s28 + $0x28] sm:$0xff] %v968_v12 }
 0x25b   : > { %v1421_v11 = vpop.f32.mrb[8].mxu1 }
 0x25c   : > { %v989_v44 = vadd.f32 %v1421_v11, %v2230_v27  ;;  %v980_v45 = vpop.f32.mrb[9].mxu1 }
 0x25d   : > { %v981_v46 = vadd.f32 %v2230_v27, %v980_v45  ;;  %v1422_v47 = vpop.f32.mrb[10].mxu1 }
 0x25e   : > { %1085 = vst [vmem:[%s2234_s28 + $0x50] sm:$0xff] %v989_v44  ;;  %v992_v51 = vadd.f32 %v1422_v47, %v2230_v27  ;;  %v983_v53 = vpop.f32.mrb[11].mxu1 }
 0x25f   : > { %1083 = vst [vmem:[%s2234_s28 + $0x40] sm:$0xff] %v981_v46  ;;  %v984_v54 = vadd.f32 %v2230_v27, %v983_v53 }
 0x260   : > { %1086 = vst [vmem:[%s2234_s28 + $0x58] sm:$0xff] %v992_v51 }
 0x261   : > { %1084 = vst [vmem:[%s2234_s28 + $0x48] sm:$0xff] %v984_v54 }
 0x263   : > { %v1425_v56 = vpop.f32.mrb[12].mxu1 }
 0x264   : > { %v1005_v57 = vadd.f32 %v1425_v56, %v2230_v27  ;;  %v996_v59 = vpop.f32.mrb[13].mxu1 }
 0x265   : > { %v997_v60 = vadd.f32 %v2230_v27, %v996_v59  ;;  %v1426_v61 = vpop.f32.mrb[14].mxu1 }
 0x266   : > { %1089 = vst [vmem:[%s2234_s28 + $0x70] sm:$0xff] %v1005_v57  ;;  %v1008_v62 = vadd.f32 %v1426_v61, %v2230_v27  ;;  %v999_v32 = vpop.f32.mrb[15].mxu1 }
 0x267   : > { %1087 = vst [vmem:[%s2234_s28 + $0x60] sm:$0xff] %v997_v60  ;;  %v1000_v63 = vadd.f32 %v2230_v27, %v999_v32 }
 0x268   : > { %1090 = vst [vmem:[%s2234_s28 + $0x78] sm:$0xff] %v1008_v62 }
 0x269   : > { %1088 = vst [vmem:[%s2234_s28 + $0x68] sm:$0xff] %v1000_v63 }
 0x26b   : > { %v1429_v0 = vpop.f32.mrb[16].mxu1 }
 0x26c   : > { %v1021_v1 = vadd.f32 %v1429_v0, %v2230_v27  ;;  %v1012_v2 = vpop.f32.mrb[17].mxu1 }
 0x26d   : > { %v1013_v4 = vadd.f32 %v2230_v27, %v1012_v2  ;;  %v1430_v5 = vpop.f32.mrb[18].mxu1 }
 0x26e   : > { %1093 = vst [vmem:[%s2234_s28 + $0x90] sm:$0xff] %v1021_v1  ;;  %v1024_v58 = vadd.f32 %v1430_v5, %v2230_v27  ;;  %v1015_v3 = vpop.f32.mrb[19].mxu1 }
 0x26f   : > { %1091 = vst [vmem:[%s2234_s28 + $0x80] sm:$0xff] %v1013_v4  ;;  %v1016_v48 = vadd.f32 %v2230_v27, %v1015_v3 }
 0x270   : > { %1094 = vst [vmem:[%s2234_s28 + $0x98] sm:$0xff] %v1024_v58 }
 0x271   : > { %1092 = vst [vmem:[%s2234_s28 + $0x88] sm:$0xff] %v1016_v48 }
 0x273   : > { %v1433_v49 = vpop.f32.mrb[20].mxu1 }
 0x274   : > { %v1037_v7 = vadd.f32 %v1433_v49, %v2230_v27  ;;  %v1028_v6 = vpop.f32.mrb[21].mxu1 }
 0x275   : > { %v1029_v39 = vadd.f32 %v2230_v27, %v1028_v6  ;;  %v1434_v8 = vpop.f32.mrb[22].mxu1 }
 0x276   : > { %1097 = vst [vmem:[%s2234_s28 + $0xb0] sm:$0xff] %v1037_v7  ;;  %v1040_v9 = vadd.f32 %v1434_v8, %v2230_v27  ;;  %v1031_v10 = vpop.f32.mrb[23].mxu1 }
 0x277   : > { %1095 = vst [vmem:[%s2234_s28 + $0xa0] sm:$0xff] %v1029_v39  ;;  %v1032_v43 = vadd.f32 %v2230_v27, %v1031_v10 }
 0x278   : > { %1098 = vst [vmem:[%s2234_s28 + $0xb8] sm:$0xff] %v1040_v9 }
 0x279   : > { %1096 = vst [vmem:[%s2234_s28 + $0xa8] sm:$0xff] %v1032_v43 }
 0x27b   : > { %v1437_v13 = vpop.f32.mrb[24].mxu1 }
 0x27c   : > { %v1053_v14 = vadd.f32 %v1437_v13, %v2230_v27  ;;  %v1044_v15 = vpop.f32.mrb[25].mxu1 }
 0x27d   : > { %v1045_v16 = vadd.f32 %v2230_v27, %v1044_v15  ;;  %v1438_v20 = vpop.f32.mrb[26].mxu1 }
 0x27e   : > { %1101 = vst [vmem:[%s2234_s28 + $0xd0] sm:$0xff] %v1053_v14  ;;  %v1056_v21 = vadd.f32 %v1438_v20, %v2230_v27  ;;  %v1047_v22 = vpop.f32.mrb[27].mxu1 }
 0x27f   : > { %1099 = vst [vmem:[%s2234_s28 + $0xc0] sm:$0xff] %v1045_v16  ;;  %v1048_v23 = vadd.f32 %v2230_v27, %v1047_v22 }
 0x280   : > { %1102 = vst [vmem:[%s2234_s28 + $0xd8] sm:$0xff] %v1056_v21 }
 0x281   : > { %1100 = vst [vmem:[%s2234_s28 + $0xc8] sm:$0xff] %v1048_v23 }
 0x283   : > { %v1441_v34 = vpop.f32.mrb[28].mxu1 }
 0x284   : > { %v1069_v33 = vadd.f32 %v1441_v34, %v2230_v27  ;;  %v1060_v55 = vpop.f32.mrb[29].mxu1 }
 0x285   : > { %v1061_v19 = vadd.f32 %v2230_v27, %v1060_v55  ;;  %v1442_v24 = vpop.f32.mrb[30].mxu1 }
 0x286   : > { %1105 = vst [vmem:[%s2234_s28 + $0xf0] sm:$0xff] %v1069_v33  ;;  %v1072_v25 = vadd.f32 %v1442_v24, %v2230_v27  ;;  %v1063_v26 = vpop.f32.mrb[31].mxu1 }
 0x287   : > { %1103 = vst [vmem:[%s2234_s28 + $0xe0] sm:$0xff] %v1061_v19  ;;  %v1064_v28 = vadd.f32 %v2230_v27, %v1063_v26 }
 0x288   : > { %1106 = vst [vmem:[%s2234_s28 + $0xf8] sm:$0xff] %v1072_v25 }
 0x289   : > { %1104 = vst [vmem:[%s2234_s28 + $0xe8] sm:$0xff] %v1064_v28 }
 0x28a   : > { %1709 = shalt.err (!%p1706_p1)
}
 0x28b   : > { %s1710_s24 = scalar_lea.hbm %s2299_s17, 4096  ;;  %s1714_s16 = scalar_lea.hbm %s2354_s5, 8192 }
 0x28c   : > { %p1711_p13 = scmp.ne.s32.totalorder %s2299_s17, %s1710_s24  ;;  %p1715_p4 = scmp.lt.u32.totalorder %s2299_s17, %s2354_s5 }
 0x28d   : > { %p1716_p5 = scmp.lt.u32.totalorder %s1714_s16, %s1710_s24  ;;  %p1718_p11 = scmp.lt.u32.totalorder %s1710_s24, %s2299_s17 }
 0x28e   : > { %p1712_p6 = pnand %p1711_p13, %p2368_p0 }
 0x28f   : > { %p1717_p8 = por %p1716_p5, %p1715_p4 }
 0x290   : > { %p1713_p10 = pneg %p1712_p6 }
 0x291   : > { %p1719_p2 = por %p1718_p11, %p1717_p8 }
 0x293   : > { %p1720_p3 = pnand %p1719_p2, %p1713_p10 }
 0x295   : > { %1723 = shalt.err (!%p1720_p3)
}
 0x296   : > { %s1774_s12 = smov 128   ;;  %s1775_s30 = smov 8  }
 0x297   : > { %1453 = dma.vmem_to_hbm [thread:$0]  (%p2368_p0), %s2301_s13, 4096, %s2299_s17, %s1108_s22, %s1774_s12, %s1774_s12, %s1775_s30  }
 0x298 PF: > { %s1136_s11 = sand.u32 1, %s1754_s18   ;;  %p2369_p7 = scmp.ne.s32.totalorder %s2359_s25, 0 }
 0x299   : > { %p2370_p9 = scmp.ge.s32.totalorder %s1766_s21, 2  ;;  %s1137_s7 = scalar_lea.sflag [#allocation4], %s1136_s11 }
 0x29b   : > { %p1467_p12 = pnand %p2370_p9, %p2369_p7 }
 0x29d   : > { %1749 = dma.done.wait (!%p1467_p12), %s1137_s7, 4096  }
 0x29e   : > { %1751 = vsyncadd (!%p1467_p12), %s1137_s7, 4294963200  ;;  %p19_p1 = scmp.ge.s32.totalorder %s1922_s29, 4   ;;  %s2371_s18 = smov %s1758_s19 }
 0x29f   : > { %s2372_s19 = smov %s1762_s20  ;;  %s2373_s20 = smov %s1938_s27 }
 0x2a0   : > { %s2374_s21 = smov %s1922_s29  ;;  %21 = sbr.rel (!%p19_p1) target bundleno = 6 (0x6), region = 93 }
 0x2a7   :  { %1142 = vsyncpa [#allocation3], 1 }
 0x2a8   :  { %1144 = vsyncpa [#allocation3 + $0x1], 1 }
 0x2a9   :  { %1145 = vsyncpa [#allocation6], 1 }
 0x2aa   :  { %1146 = vsyncpa [#allocation4], 1 }
 0x2ab   :  { %1148 = vsyncpa [#allocation4 + $0x1], 1 }

</bundles_post_ra>
